<compile_context>
chip_gen: v7x
topology: tpu7x:2x2x1
jax: 0.10.0
libtpu: 0.0.40
codegen_flags: <defaults>
</compile_context>

<pallas_src>
import jax
import jax.numpy as jnp
from jax.experimental import pallas as pl
from jax.experimental.pallas import tpu as pltpu


# --------------------------------------------------------------------------- #
# Helpers
# --------------------------------------------------------------------------- #
def _round_up(x, m):
    return ((x + m - 1) // m) * m


def _best_pad(dim, candidates=(512, 256, 128)):
    """Smallest padded size reachable with one of `candidates` as the tile
    (iterating large -> small and keeping the strict minimum prefers the
    larger tile on ties)."""
    best = None
    for c in candidates:
        p = _round_up(dim, c)
        if best is None or p < best:
            best = p
    return best


def _pick_tile(dim_padded, candidates):
    """Largest candidate tile that evenly divides the (already padded) dim."""
    for c in candidates:
        if dim_padded % c == 0:
            return c
    return dim_padded


def _vmem_budget_bytes():
    """Generation-aware VMEM budget (~3/4 of physical, capped at 96 MiB)."""
    try:
        cap = pltpu.get_tpu_info().vmem_capacity_bytes
    except Exception:
        cap = 64 << 20
    return min((cap * 3) // 4, 96 << 20)


def _select_tiles(B, d_in_p, d_out_p, budget):
    big = budget >= (64 << 20)                     # v5e/v6e-sized budget
    tm = min(512 if big else 256, _round_up(B, 16))  # bf16 sublane multiple
    tn = _pick_tile(d_out_p, (512, 256, 128))
    tk_cands = (2048, 1024, 512, 256, 128) if big else (1024, 512, 256, 128)
    tk = _pick_tile(d_in_p, tk_cands)

    def footprint(tm_, tn_, tk_):
        # x double-buffered (bf16) + W triple-buffered (bf16, Buffered(3))
        # + bias double-buffered (f32) + output/accumulator double-buffered (f32)
        return (2 * tm_ * tk_ * 2) + (3 * tk_ * tn_ * 2) + (2 * tn_ * 4) + (2 * tm_ * tn_ * 4)

    # Shrink K, then N, then M, until the buffered working set fits the budget
    # (divisibility is preserved; 128 always divides the padded dims).
    while footprint(tm, tn, tk) > budget and tk > 128:
        tk = _pick_tile(d_in_p, tuple(c for c in tk_cands if c < tk))
    while footprint(tm, tn, tk) > budget and tn > 128:
        tn = _pick_tile(d_out_p, tuple(c for c in (512, 256, 128) if c < tn))
    while footprint(tm, tn, tk) > budget and tm > 16:
        tm = _round_up(max(16, tm // 2), 16)
    return tm, tn, tk


# --------------------------------------------------------------------------- #
# Kernels
# --------------------------------------------------------------------------- #
def _linear_kernel(x_ref, w_ref, b_ref, o_ref):
    """Tiled y = x @ W + b.  Grid = (M tiles, N tiles, K tiles), K last.

    The (f32) output block doubles as the accumulator: initialized to the
    broadcast bias on the first K step, accumulated into afterwards.
    """
    k = pl.program_id(2)

    @pl.when(k == 0)
    def _init():
        o_ref[...] = jnp.broadcast_to(b_ref[...], o_ref.shape).astype(o_ref.dtype)

    o_ref[...] += jnp.dot(
        x_ref[...], w_ref[...], preferred_element_type=jnp.float32
    )


def _dout1_kernel(x_ref, w_ref, b_ref, o_ref):
    """d_out == 1 fast path: VPU multiply + lane reduction (no MXU, no padding)."""
    prod = x_ref[...] * w_ref[...]                       # (B, d_in) * (1, d_in)
    o_ref[...] = jnp.sum(prod, axis=-1, keepdims=True) + b_ref[...]


# --------------------------------------------------------------------------- #
# Parameter prep (one-time, at init) and forward pass
# --------------------------------------------------------------------------- #
def prepare_linear_params(weight, bias):
    """weight: (d_out, d_in) PyTorch layout; bias: (d_out,).

    Returns a params dict with the bf16 pre-transposed + padded MXU weight,
    the f32 padded bias, and (for d_out == 1) the raw row for the VPU path.
    """
    weight = jnp.asarray(weight, jnp.float32)
    bias = jnp.asarray(bias, jnp.float32)
    d_out, d_in = weight.shape

    d_in_p = _best_pad(d_in)
    d_out_p = _best_pad(d_out)

    w_t = (
        jnp.zeros((d_in_p, d_out_p), jnp.bfloat16)
        .at[:d_in, :d_out]
        .set(weight.T.astype(jnp.bfloat16))
    )
    b_p = jnp.zeros((1, d_out_p), jnp.float32).at[0, :d_out].set(bias)

    params = {"d_in": d_in, "d_out": d_out, "w_mxu": w_t, "b_mxu": b_p}
    if d_out == 1:
        params["w_row"] = weight.reshape(1, d_in)   # f32, unpadded
        params["b_row"] = bias.reshape(1, 1)
    return params


def linear_forward(x, params):
    """x: (B, d_in) -> (B, d_out), matching nn.Linear(d_in, d_out) forward."""
    B, d_in = x.shape
    d_out = params["d_out"]
    assert d_in == params["d_in"]

    # ---- Fast path: d_out == 1 (the shipped LinearModel default). ----------
    if "w_row" in params and B * d_in * 4 <= (4 << 20):
        x32 = x.astype(jnp.float32)
        return pl.pallas_call(
            _dout1_kernel,
            out_shape=jax.ShapeDtypeStruct((B, 1), jnp.float32),
        )(x32, params["w_row"], params["b_row"])

    # ---- General path: tiled bf16 MXU matmul with f32 accumulation. --------
    w_p, b_p = params["w_mxu"], params["b_mxu"]
    d_in_p, d_out_p = w_p.shape

    budget = _vmem_budget_bytes()
    tm, tn, tk = _select_tiles(B, d_in_p, d_out_p, budget)

    x_bf = x.astype(jnp.bfloat16)
    if d_in != d_in_p:
        # K padding must be real zeros (garbage x columns would multiply real
        # weight rows otherwise). M is NOT padded: cdiv grid + masked stores.
        x_bf = jnp.pad(x_bf, ((0, 0), (0, d_in_p - d_in)))

    grid = (pl.cdiv(B, tm), d_out_p // tn, d_in_p // tk)

    x_spec = pl.BlockSpec((tm, tk), lambda i, j, k: (i, k))
    w_map = lambda i, j, k: (k, j)
    try:
        # Deeper buffering on the critical weight stream hides DMA latency at
        # K-tile boundaries (sweepable 2-4).
        w_spec = pl.BlockSpec((tk, tn), w_map, pipeline_mode=pl.Buffered(3))
    except Exception:  # older jax without pipeline_mode / Buffered
        w_spec = pl.BlockSpec((tk, tn), w_map)
    b_spec = pl.BlockSpec((1, tn), lambda i, j, k: (0, j))
    o_spec = pl.BlockSpec((tm, tn), lambda i, j, k: (i, j))

    n_m, n_n = grid[0], grid[1]
    cost = pl.CostEstimate(
        flops=2 * B * d_out_p * d_in_p,
        transcendentals=0,
        bytes_accessed=(
            n_n * B * d_in_p * 2           # x (bf16), re-read once per N tile
            + n_m * d_in_p * d_out_p * 2   # W (bf16), re-read once per M tile
            + d_out_p * 4                  # bias (f32)
            + B * d_out_p * 4              # output (f32)
        ),
    )

    out_p = pl.pallas_call(
        _linear_kernel,
        out_shape=jax.ShapeDtypeStruct((B, d_out_p), jnp.float32),
        grid_spec=pltpu.PrefetchScalarGridSpec(
            num_scalar_prefetch=0,
            grid=grid,
            in_specs=[x_spec, w_spec, b_spec],
            out_specs=o_spec,
        ),
        compiler_params=pltpu.CompilerParams(
            dimension_semantics=("parallel", "parallel", "arbitrary"),
            vmem_limit_bytes=budget,
        ),
        cost_estimate=cost,
    )(x_bf, w_p, b_p)

    return out_p[:, :d_out] if d_out != d_out_p else out_p


def init_linear_params(key, d_in, d_out, dtype=jnp.float32):
    """Deterministic init matching PyTorch nn.Linear default (U(+/- 1/sqrt(d_in)))."""
    k_w, k_b = jax.random.split(key)
    bound = 1.0 / float(d_in) ** 0.5
    weight = jax.random.uniform(k_w, (d_out, d_in), dtype=dtype,
                                minval=-bound, maxval=bound)
    bias = jax.random.uniform(k_b, (d_out,), dtype=dtype,
                              minval=-bound, maxval=bound)
    return weight, bias


if __name__ == "__main__":
    key = jax.random.PRNGKey(0)
    k1, k2, k3, k4 = jax.random.split(key, 4)

    # --- Case 1: the shipped LinearModel default (d_in=32, d_out=1) ---------
    B1, d_in1, d_out1 = 8, 32, 1
    x1 = jax.random.normal(k1, (B1, d_in1), dtype=jnp.float32)
    w1, b1 = init_linear_params(k2, d_in1, d_out1)
    p1 = prepare_linear_params(w1, b1)
    y1 = jax.block_until_ready(linear_forward(x1, p1))
    y1_ref = x1 @ w1.T + b1
    assert y1.shape == (B1, d_out1)
    assert jnp.allclose(y1, y1_ref, atol=1e-4, rtol=1e-4), float(
        jnp.max(jnp.abs(y1 - y1_ref)))

    # --- Case 2: multi-output head -> exercises the tiled bf16 MXU path -----
    # (B not a tile multiple, d_in/d_out not multiples of 128: tests the K
    #  zero-pad, the N pad, and the masked partial M block.)
    B2, d_in2, d_out2 = 24, 160, 192
    x2 = jax.random.normal(k3, (B2, d_in2), dtype=jnp.float32)
    w2, b2 = init_linear_params(k4, d_in2, d_out2)
    p2 = prepare_linear_params(w2, b2)
    y2 = jax.block_until_ready(linear_forward(x2, p2))
    assert y2.shape == (B2, d_out2)
    # Exact-model reference (bf16 inputs, f32 accumulation) -> tight tolerance.
    y2_bf_ref = (x2.astype(jnp.bfloat16).astype(jnp.float32)
                 @ w2.T.astype(jnp.bfloat16).astype(jnp.float32)) + b2
    assert jnp.allclose(y2, y2_bf_ref, atol=1e-3, rtol=1e-3), float(
        jnp.max(jnp.abs(y2 - y2_bf_ref)))
    # Full-f32 PyTorch-equivalent reference -> loose (bf16 rounding) tolerance.
    y2_f32_ref = x2 @ w2.T + b2
    assert jnp.allclose(y2, y2_f32_ref, atol=5e-2, rtol=5e-2), float(
        jnp.max(jnp.abs(y2 - y2_f32_ref)))

    print("KERNEL_OK")
</pallas_src>

<mosaic_0001>
module attributes {stable_mosaic.version = 11 : i64} {
  func.func @_dout1_kernel(%arg0: memref<8x32xf32, #tpu.memory_space<vmem>>, %arg1: memref<1x32xf32, #tpu.memory_space<vmem>>, %arg2: memref<1x1xf32, #tpu.memory_space<vmem>>, %arg3: memref<8x1xf32, #tpu.memory_space<vmem>>) attributes {dimension_semantics = [], scalar_prefetch = 0 : i64, scratch_operands = 0 : i64, tpu.core_type = #tpu.core_type<tc>} {
    %c0 = arith.constant 0 : index
    %c0_0 = arith.constant 0 : index
    %0 = vector.load %arg0[%c0, %c0_0] : memref<8x32xf32, #tpu.memory_space<vmem>>, vector<8x32xf32>
    %c0_1 = arith.constant 0 : index
    %c0_2 = arith.constant 0 : index
    %1 = vector.load %arg1[%c0_1, %c0_2] : memref<1x32xf32, #tpu.memory_space<vmem>>, vector<1x32xf32>
    %2 = vector.broadcast %1 : vector<1x32xf32> to vector<8x32xf32>
    %3 = arith.mulf %0, %2 : vector<8x32xf32>
    %cst = arith.constant dense<0.000000e+00> : vector<8xf32>
    %4 = vector.multi_reduction <add>, %3, %cst [1] : vector<8x32xf32> to vector<8xf32>
    %5 = vector.shape_cast %4 : vector<8xf32> to vector<8x1xf32>
    %c0_3 = arith.constant 0 : index
    %c0_4 = arith.constant 0 : index
    %6 = vector.load %arg2[%c0_3, %c0_4] : memref<1x1xf32, #tpu.memory_space<vmem>>, vector<1x1xf32>
    %7 = vector.broadcast %6 : vector<1x1xf32> to vector<8x1xf32>
    %8 = arith.addf %5, %7 : vector<8x1xf32>
    %c0_5 = arith.constant 0 : index
    %c0_6 = arith.constant 0 : index
    %9 = vector.load %arg3[%c0_5, %c0_6] : memref<8x1xf32, #tpu.memory_space<vmem>>, vector<8x1xf32>
    tpu.vector_store %arg3[%c0_5, %c0_6], %8 {strides = array<i32>} : memref<8x1xf32, #tpu.memory_space<vmem>>, vector<8x1xf32>,
    return
  }
}

</mosaic_0001>

<bundles_post_ra>
// kernel: tpu_custom_call.1
= control target key start
LH: loop header
LB: loop body
LE: loop exit
PB: predicated region body
PF: predicated region fallthrough
CT: control target
= control target key end

     0   :  { %s125_s0 = inlined_call_operand.hbm [shape: f32[8,32], index: 0, kind: input, shape index: {}]   ;;  %s126_s1 = inlined_call_operand.vmem [shape: f32[1,32], index: 1, kind: input, shape index: {}]   ;;  %s127_s2 = inlined_call_operand.<no memory space> [shape: f32[1,1], index: 2, kind: input, shape index: {}]   ;;  %s128_s3 = inlined_call_operand.vmem [shape: f32[8,1], index: 3, kind: output, shape index: {}]  }
   0x1   :  { %v8_v0 = vstv %s127_s2 }
   0x2   :  { %9 = vst [vmem:[#allocation2] sm:$0x1] %v8_v0 }
   0x3   :  { %10 = vsyncpa [#allocation4], 0  ;;  %s83_s14 = smov [#allocation3]   ;;  %s59_s18 = scalar_lea.hbm %s125_s0, 128 }
   0x4   :  { %s17_s15 = sshll.u32 %s83_s14, 4  ;;  %p60_p0 = scmp.ne.s32.totalorder %s125_s0, %s59_s18  ;;  %s18_s15 = int_to_ptr.vmem [resolvable:$true] %s17_s15 }
   0x5   :  { %p63_p1 = scmp.lt.u32.totalorder %s59_s18, %s125_s0 }
   0x7   :  { %p65_p2 = pnand %p63_p1, %p60_p0 }
   0x9   :  { %68 = shalt.err (!%p65_p2)
}
   0xa   :  { %s69_s2 = scalar_lea.vmem %s18_s15, 128  ;;  %p74_p4 = scmp.lt.s32.totalorder %s18_s15, %s18_s15 }
   0xb   :  { %p70_p3 = scmp.ne.s32.totalorder %s18_s15, %s69_s2  ;;  %p75_p5 = scmp.lt.s32.totalorder %s69_s2, %s69_s2 }
   0xd   :  { %p76_p6 = por %p75_p5, %p74_p4 }
   0xf   :  { %p77_p7 = pnand %p76_p6, %p70_p3 }
  0x11   :  { %80 = shalt.err (!%p77_p7)
}
  0x12   :  { %20 = dma.hbm_to_vmem [thread:$0]  %s125_s0, 128, %s18_s15, [#allocation4]  }
  0x13   :  { %81 = dma.done.wait [#allocation4], 128  }
  0x14   :  { %82 = vsyncadd [#allocation4], 4294967168  ;;  %v28_v1 = vld [vmem:[#allocation3] sm:$0xff]  ;;  %v56_v2 = vld [vmem:[%s126_s1] ss:$0 sm:$0xff]  ;;  %vm37_vm0 = vcmask 261120  }
  0x15   :  { %v36_v3 = vmul.f32 %v56_v2, %v28_v1  ;;  %v57_v5 = vld [vmem:[#allocation2] ss:$0 sm:$0xff]  ;;  %vm49_vm1 = vcmask 7168  }
  0x17   :  { %v38_v4 = vsel %vm37_vm0, %v36_v3, 0.0 }
  0x18   :  { %39 = vadd.xlane.f32.xlu0 %v38_v4 }
  0xa5   :  { %v40_v6 = vpop.xlane.xlu0 %39 }
  0xa6   :  { %v48_v7 = vadd.f32 %v57_v5, %v40_v6 }
  0xa8   :  { %50 = vst.msk [vmem:[%s128_s3] sm:$0xff] %vm49_vm1, %v48_v7 }
  0xa9   :  { %55 = vsyncpa [#allocation4], 1 }

</bundles_post_ra>
